<compile_context>
chip_gen: v5e
topology: v5e:2x2
jax: 0.10.0
libtpu: 0.0.40
codegen_flags: <defaults>
</compile_context>

<pallas_src>
import jax
import jax.numpy as jnp
import numpy as np
from jax.experimental import pallas as pl
from jax.experimental.pallas import tpu as pltpu


# --------------------------------------------------------------------------- #
# VMEM budget: derived from the device (v7x: 64 MiB/TC, v5e/v6e: 128 MiB).
# --------------------------------------------------------------------------- #
_VMEM_LIMIT_CACHE = []


def _vmem_limit_bytes():
    """Scoped-VMEM limit for the pallas_call, derived from device capacity."""
    if not _VMEM_LIMIT_CACHE:
        cap = None
        try:
            cap = getattr(pltpu.get_tpu_info(), "vmem_capacity_bytes", None)
        except Exception:
            cap = None
        if not cap:
            cap = 64 * 1024 * 1024  # conservative fallback: v7x per-TC VMEM
        # Use at most half of physical VMEM, clamped to [32, 96] MiB:
        #   v7x (64 MiB) -> 32 MiB,  v5e/v6e (128 MiB) -> 64 MiB.
        _VMEM_LIMIT_CACHE.append(
            int(min(max(cap // 2, 32 * 1024 * 1024), 96 * 1024 * 1024)))
    return _VMEM_LIMIT_CACHE[0]


# --------------------------------------------------------------------------- #
# Kernels
# --------------------------------------------------------------------------- #
def _swap_halves(x, group):
    """Per-`group` half rotation along the last (lane) axis.

    Implements x[..., g*group + p] -> x[..., g*group + (p + group//2) % group],
    i.e. rotate_half WITHOUT the sign (the sign is folded into the sin table).
    """
    lanes = x.shape[-1]
    half = group // 2
    if group == lanes:
        if lanes % 128 == 0:
            # Lane-aligned head dim: one half-rotation rides the XLU slot.
            return pltpu.roll(x, shift=half, axis=x.ndim - 1)
        # Rare non-lane-aligned head dim: single concat (sign already folded).
        return jnp.concatenate([x[..., half:], x[..., :half]], axis=-1)
    # Lane-dense packed layout: lanes//group head vectors per 128-lane row.
    #   upper half of each group: out[l] = in[l - half]  (roll +half)
    #   lower half of each group: out[l] = in[l + half]  (roll lanes - half)
    # Neither selected value crosses a group boundary because group | 128.
    fwd = pltpu.roll(x, shift=half, axis=x.ndim - 1)
    bwd = pltpu.roll(x, shift=lanes - half, axis=x.ndim - 1)
    lane = jax.lax.broadcasted_iota(jnp.int32, x.shape, x.ndim - 1)
    return jnp.where(lane % group < half, bwd, fwd)


def _make_rope_qk_kernel(group):
    def kernel(q_ref, k_ref, cos_ref, sin_ref, qo_ref, ko_ref):
        # Compute in f32 (free: kernel is HBM-bound; v5e has no bf16 VALU).
        cos = cos_ref[...].astype(jnp.float32)
        sin = sin_ref[...].astype(jnp.float32)
        q = q_ref[...].astype(jnp.float32)
        qo_ref[...] = (q * cos + _swap_halves(q, group) * sin).astype(qo_ref.dtype)
        k = k_ref[...].astype(jnp.float32)
        ko_ref[...] = (k * cos + _swap_halves(k, group) * sin).astype(ko_ref.dtype)
    return kernel


def _make_rope_q_kernel(group):
    def kernel(q_ref, cos_ref, sin_ref, qo_ref):
        cos = cos_ref[...].astype(jnp.float32)
        sin = sin_ref[...].astype(jnp.float32)
        q = q_ref[...].astype(jnp.float32)
        qo_ref[...] = (q * cos + _swap_halves(q, group) * sin).astype(qo_ref.dtype)
    return kernel


# --------------------------------------------------------------------------- #
# Layout / tiling policy
# --------------------------------------------------------------------------- #
def _plan_layout(S, D):
    """Return (rows, lanes, packed) for a lane-dense view of the [S, D] slab."""
    if D % 128 != 0 and 128 % D == 0 and (S * D) % 128 == 0:
        return (S * D) // 128, 128, True   # pack 128//D positions per lane row
    return S, D, False


def _divisors_desc(n):
    return [d for d in range(n, 0, -1) if n % d == 0]


def _choose_tiles(B, H, R, L, itemsize, n_streams, vmem_limit):
    """Pick (TH, TR) head/row tile sizes.

    Policy: cap per-step data so double-buffering fits comfortably inside the
    scoped VMEM limit, prefer grids with >= 4 total steps (both v7x
    TensorCores get work, DMA pipeline has overlap), then take the largest
    block to amortize the ~0.35us per-grid-step overhead.
    """
    itemsize = int(itemsize)
    sub = (8 * 4) // max(itemsize, 1)   # sublane packing: f32 8, bf16 16, i8 32
    per_step_cap = min((vmem_limit * 2) // 3 // 2,
                       max(vmem_limit // 4, 4 * 1024 * 1024))
    tr_cands = [R] + [d for d in _divisors_desc(R) if d % sub == 0 and d != R]
    th_cands = _divisors_desc(H)

    best_key, best = None, None
    for tr in tr_cands:
        for th in th_cands:
            psb = (n_streams * th + 2) * tr * L * itemsize  # q/k in+out, cos, sin
            if psb > per_step_cap:
                continue
            steps = B * (H // th) * (R // tr)
            key = (min(steps, 4), psb)
            if best_key is None or key > best_key:
                best_key, best = key, (th, tr)
    if best is None:          # pathological shapes: minimum legal block
        return 1, tr_cands[-1]
    return best


# --------------------------------------------------------------------------- #
# pallas_call wrapper
# --------------------------------------------------------------------------- #
def rope_pallas(q, k, cos, sin_signed, *, donate_inputs=False):
    """Apply RoPE to q (and optionally k).

    q, k: [B, H, S, D] (k may be None -> q-only kernel, half the HBM traffic).
    cos, sin_signed: [PB, S, D] with PB in {1, B}; sin_signed has rotate_half's
    sign pre-folded, so x*cos + rotate_half(x)*sin == x*cos + swap(x)*sin_signed.

    donate_inputs aliases q (and k) with the outputs.  NOTE: this only saves
    HBM if the caller really donates the buffers at the jit boundary
    (jax.jit(..., donate_argnums=...)); otherwise XLA inserts defensive copies
    that cost a full extra HBM pass.
    """
    B, H, S, D = q.shape
    assert D % 2 == 0
    PB = cos.shape[0]
    assert cos.shape == (PB, S, D) and sin_signed.shape == (PB, S, D)
    assert PB in (1, B)
    fused = k is not None
    if fused:
        assert k.shape == q.shape, "fused path needs matching q/k shapes"

    # Lane-dense packing for head dims < 128: free reshape of the contiguous
    # [S, D] slab to [S*D//128, 128] so DMAs and stores use all 128 lanes.
    R, L, packed = _plan_layout(S, D)
    pack = (lambda x: x.reshape(x.shape[:-2] + (R, L))) if packed else (lambda x: x)
    qp, cp, sp = pack(q), pack(cos), pack(sin_signed)
    kp = pack(k) if fused else None

    n_streams = 4 if fused else 2
    vmem_limit = _vmem_limit_bytes()
    TH, TR = _choose_tiles(B, H, R, L, q.dtype.itemsize, n_streams, vmem_limit)

    # Head axis innermost: the cos/sin block index is constant across the
    # inner loop, so Pallas skips re-DMAing it for every head tile.
    grid = (B, R // TR, H // TH)
    qk_spec = pl.BlockSpec((None, TH, TR, L), lambda b, r, h: (b, h, r, 0))
    if PB == B:
        cs_spec = pl.BlockSpec((None, TR, L), lambda b, r, h: (b, r, 0))
    else:
        cs_spec = pl.BlockSpec((None, TR, L), lambda b, r, h: (0, r, 0))

    params = pltpu.CompilerParams(
        dimension_semantics=("parallel", "parallel", "parallel"),
        vmem_limit_bytes=vmem_limit,
    )

    if fused:
        extra = {"input_output_aliases": {0: 0, 1: 1}} if donate_inputs else {}
        qo, ko = pl.pallas_call(
            _make_rope_qk_kernel(D),
            out_shape=(jax.ShapeDtypeStruct(qp.shape, q.dtype),
                       jax.ShapeDtypeStruct(qp.shape, k.dtype)),
            grid_spec=pltpu.PrefetchScalarGridSpec(
                num_scalar_prefetch=0, grid=grid,
                in_specs=[qk_spec, qk_spec, cs_spec, cs_spec],
                out_specs=[qk_spec, qk_spec]),
            compiler_params=params,
            **extra,
        )(qp, kp, cp, sp)
        if packed:
            qo, ko = qo.reshape(q.shape), ko.reshape(k.shape)
        return qo, ko

    extra = {"input_output_aliases": {0: 0}} if donate_inputs else {}
    qo = pl.pallas_call(
        _make_rope_q_kernel(D),
        out_shape=jax.ShapeDtypeStruct(qp.shape, q.dtype),
        grid_spec=pltpu.PrefetchScalarGridSpec(
            num_scalar_prefetch=0, grid=grid,
            in_specs=[qk_spec, cs_spec, cs_spec],
            out_specs=qk_spec),
        compiler_params=params,
        **extra,
    )(qp, cp, sp)
    return qo.reshape(q.shape) if packed else qo


# --------------------------------------------------------------------------- #
# Module-level glue
# --------------------------------------------------------------------------- #
class RotaryEmbedding:
    """JAX/Pallas port of the PyTorch RotaryEmbedding module (gSASRec)."""

    def __init__(self, dim, max_position_embeddings=2048, base=10000):
        self.dim = dim
        self.max_position_embeddings = max_position_embeddings
        self.base = base
        self.inv_freq = 1.0 / (
            self.base ** (jnp.arange(0, dim, 2, dtype=jnp.float32) / dim))
        self._cast_cache = {}
        self._set_cos_sin_cache(max_position_embeddings)

    def _set_cos_sin_cache(self, seq_len):
        self.max_seq_len_cached = seq_len
        t = jnp.arange(seq_len, dtype=jnp.float32)
        freqs = jnp.einsum("i,j->ij", t, self.inv_freq)              # [S, D/2]
        emb = jnp.concatenate([freqs, freqs], axis=-1)               # [S, D]
        self.cos_cached = jnp.cos(emb)                               # [S, D] f32
        self.sin_cached = jnp.sin(emb)                               # [S, D] f32
        # rotate_half's sign folded into the cache once (free at runtime):
        #   x*cos + rotate_half(x)*sin == x*cos + swap_halves(x)*sin_signed
        s = jnp.sin(freqs)
        self.sin_signed_cached = jnp.concatenate([-s, s], axis=-1)   # [S, D] f32
        self._cast_cache = {}

    def _tables(self, dtype):
        # Memoized per-dtype cast of the caches (done once, not per call).
        name = jnp.dtype(dtype).name
        if name not in self._cast_cache:
            self._cast_cache[name] = (self.cos_cached.astype(dtype),
                                      self.sin_signed_cached.astype(dtype))
        return self._cast_cache[name]

    def __call__(self, query_states, key_states=None, seq_len=None,
                 position_ids=None):
        # TODO(synk): the reference forward calls apply_rotary_pos_emb with a
        # mismatched arity (would raise in PyTorch); standard RoPE semantics
        # (rotate q, and k if provided, with gathered cos/sin) are kept here.
        seq_len = query_states.shape[2] if not seq_len else seq_len
        if seq_len > self.max_seq_len_cached:
            self._set_cos_sin_cache(seq_len)
        dtype = query_states.dtype
        cos_t, sin_t = self._tables(dtype)

        if position_ids is None:
            # Default positions: plain slice, no gather / no extra HBM copy.
            cos = cos_t[:seq_len][None]                              # [1, S, D]
            sin = sin_t[:seq_len][None]
        else:
            position_ids = jnp.asarray(position_ids)
            if position_ids.ndim == 1:
                position_ids = position_ids[None, :]
            cos = jnp.take(cos_t, position_ids, axis=0)              # [PB, S, D]
            sin = jnp.take(sin_t, position_ids, axis=0)

        if key_states is None:
            return rope_pallas(query_states, None, cos, sin)         # q-only kernel
        if key_states.shape == query_states.shape:
            return rope_pallas(query_states, key_states, cos, sin)   # fused q+k
        # Mismatched head counts (e.g. GQA): rotate each with the q-only kernel.
        return (rope_pallas(query_states, None, cos, sin),
                rope_pallas(key_states, None, cos, sin))


# --------------------------------------------------------------------------- #
# Pure-JAX reference
# --------------------------------------------------------------------------- #
def _rotate_half_ref(x):
    half = x.shape[-1] // 2
    return jnp.concatenate([-x[..., half:], x[..., :half]], axis=-1)


def _rope_ref(q, k, cos, sin):
    # cos/sin: [PB, S, D] -> broadcast over heads
    cos = cos[:, None, :, :]
    sin = sin[:, None, :, :]
    return (q * cos + _rotate_half_ref(q) * sin,
            k * cos + _rotate_half_ref(k) * sin)


# --------------------------------------------------------------------------- #
# main
# --------------------------------------------------------------------------- #
if __name__ == "__main__":
    key = jax.random.PRNGKey(0)
    k0, k1, k2, k3, k4 = jax.random.split(key, 5)

    # --- case 1: D=32 (lane-dense packed path), default ids, fused q+k ------
    B, H, S, D = 2, 4, 8, 32
    q = jax.random.normal(k0, (B, H, S, D), dtype=jnp.float32)
    k = jax.random.normal(k1, (B, H, S, D), dtype=jnp.float32)
    rope = RotaryEmbedding(dim=D)
    q_out, k_out = rope(q, k)
    jax.block_until_ready((q_out, k_out))

    cos_ref = rope.cos_cached[:S][None]                   # [1, S, D]
    sin_ref = rope.sin_cached[:S][None]
    q_exp, k_exp = _rope_ref(q, k, cos_ref, sin_ref)
    np.testing.assert_allclose(np.asarray(q_out), np.asarray(q_exp),
                               rtol=1e-5, atol=1e-5)
    np.testing.assert_allclose(np.asarray(k_out), np.asarray(k_exp),
                               rtol=1e-5, atol=1e-5)

    # --- case 2: D=128 (XLU roll path), per-batch position_ids, fused q+k ---
    B2, H2, S2, D2 = 2, 2, 8, 128
    q2 = jax.random.normal(k2, (B2, H2, S2, D2), dtype=jnp.float32)
    kk2 = jax.random.normal(k3, (B2, H2, S2, D2), dtype=jnp.float32)
    rope2 = RotaryEmbedding(dim=D2)
    pos = jnp.stack([jnp.arange(S2), jnp.arange(S2) + 3]).astype(jnp.int32)
    q2_out, k2_out = rope2(q2, kk2, position_ids=pos)
    jax.block_until_ready((q2_out, k2_out))

    cos2 = rope2.cos_cached[pos]                          # [B, S, D]
    sin2 = rope2.sin_cached[pos]
    q2_exp, k2_exp = _rope_ref(q2, kk2, cos2, sin2)
    np.testing.assert_allclose(np.asarray(q2_out), np.asarray(q2_exp),
                               rtol=1e-5, atol=1e-5)
    np.testing.assert_allclose(np.asarray(k2_out), np.asarray(k2_exp),
                               rtol=1e-5, atol=1e-5)

    # --- case 3: q-only path, bf16 inputs, D=64 (packed) ---------------------
    B3, H3, S3, D3 = 2, 4, 16, 64
    q3_f32 = jax.random.normal(k4, (B3, H3, S3, D3), dtype=jnp.float32)
    rope3 = RotaryEmbedding(dim=D3)
    q3_out = rope3(q3_f32.astype(jnp.bfloat16))
    jax.block_until_ready(q3_out)

    cos3 = rope3.cos_cached[:S3][None]
    sin3 = rope3.sin_cached[:S3][None]
    q3_exp, _ = _rope_ref(q3_f32, q3_f32, cos3, sin3)
    np.testing.assert_allclose(np.asarray(q3_out, dtype=np.float32),
                               np.asarray(q3_exp), rtol=5e-2, atol=5e-2)

    print("KERNEL_OK")
</pallas_src>

<mosaic_0001>
module attributes {stable_mosaic.version = 11 : i64} {
  func.func @kernel(%arg0: i32, %arg1: i32, %arg2: i32, %arg3: memref<1x2x2x128xf32, #tpu.memory_space<vmem>>, %arg4: memref<1x2x2x128xf32, #tpu.memory_space<vmem>>, %arg5: memref<1x2x128xf32, #tpu.memory_space<vmem>>, %arg6: memref<1x2x128xf32, #tpu.memory_space<vmem>>, %arg7: memref<1x2x2x128xf32, #tpu.memory_space<vmem>>, %arg8: memref<1x2x2x128xf32, #tpu.memory_space<vmem>>) attributes {dimension_semantics = [#tpu.dimension_semantics<parallel>, #tpu.dimension_semantics<parallel>, #tpu.dimension_semantics<parallel>], iteration_bounds = array<i64: 2, 1, 2>, scalar_prefetch = 0 : i64, scratch_operands = 0 : i64, tpu.core_type = #tpu.core_type<tc>, window_params = [{transform_indices = @transform_0, window_bounds = array<i64: 1, 2, 2, 128>}, {transform_indices = @transform_1, window_bounds = array<i64: 1, 2, 2, 128>}, {transform_indices = @transform_2, window_bounds = array<i64: 1, 2, 128>}, {transform_indices = @transform_3, window_bounds = array<i64: 1, 2, 128>}, {transform_indices = @transform_4, window_bounds = array<i64: 1, 2, 2, 128>}, {transform_indices = @transform_5, window_bounds = array<i64: 1, 2, 2, 128>}]} {
    %c0 = arith.constant 0 : index
    %c0_0 = arith.constant 0 : index
    %c0_1 = arith.constant 0 : index
    %0 = vector.load %arg5[%c0, %c0_0, %c0_1] : memref<1x2x128xf32, #tpu.memory_space<vmem>>, vector<1x2x128xf32>
    %1 = vector.shape_cast %0 : vector<1x2x128xf32> to vector<2x128xf32>
    %c0_2 = arith.constant 0 : index
    %c0_3 = arith.constant 0 : index
    %c0_4 = arith.constant 0 : index
    %2 = vector.load %arg6[%c0_2, %c0_3, %c0_4] : memref<1x2x128xf32, #tpu.memory_space<vmem>>, vector<1x2x128xf32>
    %3 = vector.shape_cast %2 : vector<1x2x128xf32> to vector<2x128xf32>
    %c0_5 = arith.constant 0 : index
    %c0_6 = arith.constant 0 : index
    %c0_7 = arith.constant 0 : index
    %c0_8 = arith.constant 0 : index
    %4 = vector.load %arg3[%c0_5, %c0_6, %c0_7, %c0_8] : memref<1x2x2x128xf32, #tpu.memory_space<vmem>>, vector<1x2x2x128xf32>
    %5 = vector.shape_cast %4 : vector<1x2x2x128xf32> to vector<2x2x128xf32>
    %6 = vector.shape_cast %1 : vector<2x128xf32> to vector<1x2x128xf32>
    %7 = vector.broadcast %6 : vector<1x2x128xf32> to vector<2x2x128xf32>
    %8 = arith.mulf %5, %7 : vector<2x2x128xf32>
    %c16_i32 = arith.constant 16 : i32
    %9 = tpu.dynamic_rotate %5 by %c16_i32 dim 2 : vector<2x2x128xf32>, i32 -> vector<2x2x128xf32>
    %c112_i32 = arith.constant 112 : i32
    %10 = tpu.dynamic_rotate %5 by %c112_i32 dim 2 : vector<2x2x128xf32>, i32 -> vector<2x2x128xf32>
    %11 = tpu.iota {dimensions = array<i32: 2>} : vector<2x2x128xi32>
    %c32_i32 = arith.constant 32 : i32
    %c0_i32 = arith.constant 0 : i32
    %12 = arith.cmpi eq, %c32_i32, %c0_i32 : i32
    %c1_i32 = arith.constant 1 : i32
    %13 = arith.select %12, %c1_i32, %c32_i32 : i32
    %14 = vector.broadcast %13 : i32 to vector<2x2x128xi32>
    %15 = arith.remsi %11, %14 : vector<2x2x128xi32>
    %c0_i32_9 = arith.constant 0 : i32
    %16 = vector.broadcast %c0_i32_9 : i32 to vector<2x2x128xi32>
    %17 = arith.cmpi ne, %15, %16 : vector<2x2x128xi32>
    %c0_i32_10 = arith.constant 0 : i32
    %18 = vector.broadcast %c0_i32_10 : i32 to vector<2x2x128xi32>
    %19 = arith.cmpi slt, %15, %18 : vector<2x2x128xi32>
    %c0_i32_11 = arith.constant 0 : i32
    %20 = arith.cmpi slt, %13, %c0_i32_11 : i32
    %21 = vector.broadcast %20 : i1 to vector<2x2x128xi1>
    %22 = vector.broadcast %21 : vector<2x2x128xi1> to vector<2x2x128xi1>
    %23 = arith.xori %19, %22 : vector<2x2x128xi1>
    %24 = arith.andi %23, %17 : vector<2x2x128xi1>
    %25 = vector.broadcast %13 : i32 to vector<2x2x128xi32>
    %26 = arith.addi %15, %25 : vector<2x2x128xi32>
    %27 = arith.select %24, %26, %15 : vector<2x2x128xi1>, vector<2x2x128xi32>
    %c16_i32_12 = arith.constant 16 : i32
    %28 = vector.broadcast %c16_i32_12 : i32 to vector<2x2x128xi32>
    %29 = arith.cmpi slt, %27, %28 : vector<2x2x128xi32>
    %30 = arith.select %29, %10, %9 : vector<2x2x128xi1>, vector<2x2x128xf32>
    %31 = vector.shape_cast %3 : vector<2x128xf32> to vector<1x2x128xf32>
    %32 = vector.broadcast %31 : vector<1x2x128xf32> to vector<2x2x128xf32>
    %33 = arith.mulf %30, %32 : vector<2x2x128xf32>
    %34 = arith.addf %8, %33 : vector<2x2x128xf32>
    %c0_13 = arith.constant 0 : index
    %c0_14 = arith.constant 0 : index
    %c0_15 = arith.constant 0 : index
    %c0_16 = arith.constant 0 : index
    %35 = vector.load %arg7[%c0_13, %c0_14, %c0_15, %c0_16] : memref<1x2x2x128xf32, #tpu.memory_space<vmem>>, vector<1x2x2x128xf32>
    %36 = vector.shape_cast %35 : vector<1x2x2x128xf32> to vector<2x2x128xf32>
    %37 = vector.shape_cast %34 : vector<2x2x128xf32> to vector<1x2x2x128xf32>
    tpu.vector_store %arg7[%c0_13, %c0_14, %c0_15, %c0_16], %37 {strides = array<i32>} : memref<1x2x2x128xf32, #tpu.memory_space<vmem>>, vector<1x2x2x128xf32>,
    %c0_17 = arith.constant 0 : index
    %c0_18 = arith.constant 0 : index
    %c0_19 = arith.constant 0 : index
    %c0_20 = arith.constant 0 : index
    %38 = vector.load %arg4[%c0_17, %c0_18, %c0_19, %c0_20] : memref<1x2x2x128xf32, #tpu.memory_space<vmem>>, vector<1x2x2x128xf32>
    %39 = vector.shape_cast %38 : vector<1x2x2x128xf32> to vector<2x2x128xf32>
    %40 = vector.shape_cast %1 : vector<2x128xf32> to vector<1x2x128xf32>
    %41 = vector.broadcast %40 : vector<1x2x128xf32> to vector<2x2x128xf32>
    %42 = arith.mulf %39, %41 : vector<2x2x128xf32>
    %c16_i32_21 = arith.constant 16 : i32
    %43 = tpu.dynamic_rotate %39 by %c16_i32_21 dim 2 : vector<2x2x128xf32>, i32 -> vector<2x2x128xf32>
    %c112_i32_22 = arith.constant 112 : i32
    %44 = tpu.dynamic_rotate %39 by %c112_i32_22 dim 2 : vector<2x2x128xf32>, i32 -> vector<2x2x128xf32>
    %45 = tpu.iota {dimensions = array<i32: 2>} : vector<2x2x128xi32>
    %c32_i32_23 = arith.constant 32 : i32
    %c0_i32_24 = arith.constant 0 : i32
    %46 = arith.cmpi eq, %c32_i32_23, %c0_i32_24 : i32
    %c1_i32_25 = arith.constant 1 : i32
    %47 = arith.select %46, %c1_i32_25, %c32_i32_23 : i32
    %48 = vector.broadcast %47 : i32 to vector<2x2x128xi32>
    %49 = arith.remsi %45, %48 : vector<2x2x128xi32>
    %c0_i32_26 = arith.constant 0 : i32
    %50 = vector.broadcast %c0_i32_26 : i32 to vector<2x2x128xi32>
    %51 = arith.cmpi ne, %49, %50 : vector<2x2x128xi32>
    %c0_i32_27 = arith.constant 0 : i32
    %52 = vector.broadcast %c0_i32_27 : i32 to vector<2x2x128xi32>
    %53 = arith.cmpi slt, %49, %52 : vector<2x2x128xi32>
    %c0_i32_28 = arith.constant 0 : i32
    %54 = arith.cmpi slt, %47, %c0_i32_28 : i32
    %55 = vector.broadcast %54 : i1 to vector<2x2x128xi1>
    %56 = vector.broadcast %55 : vector<2x2x128xi1> to vector<2x2x128xi1>
    %57 = arith.xori %53, %56 : vector<2x2x128xi1>
    %58 = arith.andi %57, %51 : vector<2x2x128xi1>
    %59 = vector.broadcast %47 : i32 to vector<2x2x128xi32>
    %60 = arith.addi %49, %59 : vector<2x2x128xi32>
    %61 = arith.select %58, %60, %49 : vector<2x2x128xi1>, vector<2x2x128xi32>
    %c16_i32_29 = arith.constant 16 : i32
    %62 = vector.broadcast %c16_i32_29 : i32 to vector<2x2x128xi32>
    %63 = arith.cmpi slt, %61, %62 : vector<2x2x128xi32>
    %64 = arith.select %63, %44, %43 : vector<2x2x128xi1>, vector<2x2x128xf32>
    %65 = vector.shape_cast %3 : vector<2x128xf32> to vector<1x2x128xf32>
    %66 = vector.broadcast %65 : vector<1x2x128xf32> to vector<2x2x128xf32>
    %67 = arith.mulf %64, %66 : vector<2x2x128xf32>
    %68 = arith.addf %42, %67 : vector<2x2x128xf32>
    %c0_30 = arith.constant 0 : index
    %c0_31 = arith.constant 0 : index
    %c0_32 = arith.constant 0 : index
    %c0_33 = arith.constant 0 : index
    %69 = vector.load %arg8[%c0_30, %c0_31, %c0_32, %c0_33] : memref<1x2x2x128xf32, #tpu.memory_space<vmem>>, vector<1x2x2x128xf32>
    %70 = vector.shape_cast %69 : vector<1x2x2x128xf32> to vector<2x2x128xf32>
    %71 = vector.shape_cast %68 : vector<2x2x128xf32> to vector<1x2x2x128xf32>
    tpu.vector_store %arg8[%c0_30, %c0_31, %c0_32, %c0_33], %71 {strides = array<i32>} : memref<1x2x2x128xf32, #tpu.memory_space<vmem>>, vector<1x2x2x128xf32>,
    return
  }
  func.func @transform_0(%arg0: i32, %arg1: i32, %arg2: i32) -> (i32, i32, i32, i32) {
    %c0_i32 = arith.constant 0 : i32
    %c0_i32_0 = arith.constant 0 : i32
    return %arg0, %arg2, %arg1, %c0_i32 : i32, i32, i32, i32
  }
  func.func @transform_1(%arg0: i32, %arg1: i32, %arg2: i32) -> (i32, i32, i32, i32) {
    %c0_i32 = arith.constant 0 : i32
    %c0_i32_0 = arith.constant 0 : i32
    return %arg0, %arg2, %arg1, %c0_i32 : i32, i32, i32, i32
  }
  func.func @transform_2(%arg0: i32, %arg1: i32, %arg2: i32) -> (i32, i32, i32) {
    %c0_i32 = arith.constant 0 : i32
    %c0_i32_0 = arith.constant 0 : i32
    %c0_i32_1 = arith.constant 0 : i32
    return %c0_i32, %arg1, %c0_i32_0 : i32, i32, i32
  }
  func.func @transform_3(%arg0: i32, %arg1: i32, %arg2: i32) -> (i32, i32, i32) {
    %c0_i32 = arith.constant 0 : i32
    %c0_i32_0 = arith.constant 0 : i32
    %c0_i32_1 = arith.constant 0 : i32
    return %c0_i32, %arg1, %c0_i32_0 : i32, i32, i32
  }
  func.func @transform_4(%arg0: i32, %arg1: i32, %arg2: i32) -> (i32, i32, i32, i32) {
    %c0_i32 = arith.constant 0 : i32
    %c0_i32_0 = arith.constant 0 : i32
    return %arg0, %arg2, %arg1, %c0_i32 : i32, i32, i32, i32
  }
  func.func @transform_5(%arg0: i32, %arg1: i32, %arg2: i32) -> (i32, i32, i32, i32) {
    %c0_i32 = arith.constant 0 : i32
    %c0_i32_0 = arith.constant 0 : i32
    return %arg0, %arg2, %arg1, %c0_i32 : i32, i32, i32, i32
  }
}

</mosaic_0001>

<bundles_post_ra>
// kernel: tpu_custom_call.1
= control target key start
LH: loop header
LB: loop body
LE: loop exit
PB: predicated region body
PF: predicated region fallthrough
CT: control target
= control target key end

     0   :  { %s1297_s0 = inlined_call_operand.hbm [shape: f32[2,4,2,128], index: 0, kind: input, shape index: {}]   ;;  %s1298_s1 = inlined_call_operand.hbm [shape: f32[2,4,2,128], index: 1, kind: input, shape index: {}]   ;;  %s1299_s2 = inlined_call_operand.hbm [shape: f32[1,2,128], index: 2, kind: input, shape index: {}]   ;;  %s1300_s3 = inlined_call_operand.vmem [shape: f32[1,2,128], index: 3, kind: input, shape index: {}]   ;;  %s1301_s4 = inlined_call_operand.hbm [shape: f32[2,4,2,128], index: 4, kind: output, shape index: {0}]   ;;  %s1302_s5 = inlined_call_operand.hbm [shape: f32[2,4,2,128], index: 5, kind: output, shape index: {1}]  }
   0x1   :  { %1311 = sst [smem:[#allocation21_spill]] %s1299_s2 }
   0x2   :  { %1312 = sst [smem:[#allocation22_spill]] %s1300_s3 }
   0x3   :  { %1313 = sst [smem:[#allocation23_spill]] %s1301_s4 }
   0x4   :  { %1314 = sst [smem:[#allocation24_spill]] %s1302_s5 }
   0x5   :  { %11 = vsyncpa [#allocation3], 0 }
   0x6   :  { %13 = vsyncpa [#allocation3 + $0x1], 0 }
   0x7   :  { %14 = vsyncpa [#allocation6], 0 }
   0x8   :  { %16 = vsyncpa [#allocation6 + $0x1], 0 }
   0x9   :  { %17 = vsyncpa [#allocation4], 0 }
   0xa   :  { %19 = vsyncpa [#allocation4 + $0x1], 0 }
   0xb   :  { %20 = vsyncpa [#allocation10], 0 }
   0xc   :  { %22 = vsyncpa [#allocation10 + $0x1], 0  ;;  %s1069_s18 = smov 0   ;;  %s1071_s19 = smov 0  }
   0xd   :  { %s1073_s20 = smov 0   ;;  %s1075_s21 = smov 0  }
   0xe   :  { %s1077_s22 = smov 0   ;;  %s1079_s23 = smov 0  }
   0xf   :  { %s1081_s24 = smov 0   ;;  %s1083_s25 = smov 0  }
  0x10 LB: > { %1315 = sst [smem:[#allocation16_spill]] %s1002_s18  ;;  %s1110_s26 = sadd.s32 4294967295, %s1030_s25   ;;  %s1030_s25 = sphi %s1083_s25, %s28_s25   ;;  %s1026_s24 = sphi %s1081_s24, %s1342_s24   ;;  %s1022_s23 = sphi %s1079_s23, %s1337_s23   ;;  %s1018_s22 = sphi %s1077_s22, %s1341_s22   ;;  %s1014_s21 = sphi %s1075_s21, %s1336_s21   ;;  %s1010_s20 = sphi %s1073_s20, %s1340_s20   ;;  %s1006_s19 = sphi %s1071_s19, %s1339_s19   ;;  %s1002_s18 = sphi %s1069_s18, %s1338_s18  }
  0x11   : > { %1316 = sst [smem:[#allocation17_spill]] %s1022_s23  ;;  %s668_s27 = sadd.s32 4294967294, %s1030_s25  }
  0x12   : > { %p65_p0 = scmp.ne.s32.totalorder %s1010_s20, %s1006_s19  ;;  %p66_p1 = scmp.eq.s32.totalorder %s1030_s25, 0 }
  0x13   : > { %p71_p2 = scmp.ne.s32.totalorder %s1006_s19, %s1002_s18  ;;  %p72_p3 = scmp.eq.s32.totalorder %s1110_s26, 0 }
  0x14   : > { %p181_p4 = scmp.eq.s32.totalorder %s1110_s26, 3  ;;  %p1121_p5 = por %p66_p1, %p65_p0 }
  0x15   : > { %p187_p6 = scmp.eq.s32.totalorder %s668_s27, 3  ;;  %p1127_p7 = por %p72_p3, %p71_p2 }
  0x16   : > { %p1131_p8 = por %p181_p4, %p65_p0  ;;  %p669_p10 = scmp.ge.s32.totalorder %s1030_s25, 1 }
  0x17   : > { %p1135_p9 = por %p187_p6, %p71_p2  ;;  %p224_p11 = scmp.lt.s32.totalorder %s1030_s25, 5 }
  0x18   : > { %s1319_s6 = scalar_select %p1131_p8, 1, 0 }
  0x19   : > { %s1321_s7 = scalar_select %p1135_p9, 1, 0 }
  0x1a   : > { %1320 = sst [smem:[#allocation18_spill]] %s1319_s6  ;;  %p1144_p12 = pnand %p669_p10, %p224_p11 }
  0x1b   : > { %1322 = sst [smem:[#allocation19_spill]] %s1321_s7  ;;  %s1032_s12 = smov [#allocation7]  }
  0x1c   : > { %s1323_s2 = sld [smem:[#allocation21_spill]]  ;;  %s240_s13 = sshll.u32 %s1032_s12, 4  ;;  %s241_s13 = int_to_ptr.vmem [resolvable:$true] %s240_s13 }
  0x1d   : > { %p709_p13 = pneg %p1144_p12  ;;  %p728_p0 = scmp.lt.s32.totalorder %s1030_s25, 4 }
  0x1e   : > { %s40_s15 = sadd.s32 1, %s1022_s23  ;;  %s47_s16 = sadd.s32 1, %s1026_s24 }
  0x1f   : > { %p710_p1 = pnand %p709_p13, %p72_p3  ;;  %p1155_p2 = pnand %p728_p0, %p1121_p5 }
  0x20   : > { %p41_p4 = scmp.ge.s32.totalorder %s40_s15, 2  ;;  %s258_s17 = sand.u32 1, %s1010_s20  }
  0x21   : > { %s674_s27 = sshll.u32 %s1022_s23, 1  ;;  %s673_s29 = sshll.u32 %s258_s17, 2 }
  0x22   : > { %s238_s10 = sshll.u32 %s1323_s2, 4  ;;  %s1344_s15 = smov (%p41_p4, %s40_s15), 0  ;;  %s239_s10 = int_to_ptr.hbm [resolvable:$true] %s238_s10 }
  0x23   : > { %712 = dma.hbm_to_vmem [thread:$0]  (!%p710_p1), %s239_s10, 32, %s241_s13, [#allocation6]  }
  0x24   : > { %1326 = sst [smem:[#allocation20_spill]] %s1344_s15  ;;  %s1346_s16 = smov (!%p41_p4, %s47_s16), %s1026_s24 }
  0x25   : > { %s52_s8 = ssub.s32 %s1022_s23, %s1344_s15  ;;  %p49_p6 = scmp.ge.s32.totalorder %s1346_s16, 2 }
  0x26   : > { %s675_s9 = sshll.u32 %s1026_s24, 2  ;;  %s262_s12 = scalar_lea.vmem [#allocation2], %s673_s29 }
  0x27   : > { %s1348_s16 = smov (%p49_p6, %s1346_s16), 0  ;;  %s268_s10 = sadd.s32 %s675_s9, %s674_s27 }
  0x28   : > { %s273_s13 = sshll.u32 %s262_s12, 4  ;;  %s51_s28 = ssub.s32 %s1026_s24, %s1348_s16  ;;  %s274_s13 = int_to_ptr.vmem [resolvable:$true] %s273_s13 }
  0x29   : > { %s676_s2 = sshll.u32 %s268_s10, 1  ;;  %s53_s7 = sor.u32 %s52_s8, %s51_s28 }
  0x2a   : > { %s270_s6 = scalar_lea.hbm %s1297_s0, %s676_s2  ;;  %p56_p5 = scmp.eq.s32.totalorder %s53_s7, 0 }
  0x2b   : > { %s271_s15 = sshll.u32 %s270_s6, 4  ;;  %s1327_s23 = sadd.s32 1, %s1010_s20  ;;  %s272_s15 = int_to_ptr.hbm [resolvable:$true] %s271_s15 }
  0x2c   : > { %s1179_s4 = scalar_select %p56_p5, %s1010_s20, %s1327_s23  }
  0x2d   : > { %s259_s3 = scalar_lea.sflag [#allocation3], %s258_s17  ;;  %s1033_s27 = smov 32  }
  0x2e   : > { %s1034_s9 = smov 2   ;;  %s295_s8 = scalar_lea.hbm %s1298_s1, %s676_s2 }
  0x2f   : > { %716 = dma.hbm_to_vmem [thread:$0]  (!%p1155_p2), %s272_s15, 64, %s274_s13, %s259_s3, %s1033_s27, %s1033_s27, %s1034_s9  }
  0x30   : > { %s296_s5 = sshll.u32 %s295_s8, 4  ;;  %s287_s18 = scalar_lea.vmem [#allocation5], %s673_s29  ;;  %s297_s5 = int_to_ptr.hbm [resolvable:$true] %s296_s5 }
  0x31   : > { %s298_s12 = sshll.u32 %s287_s18, 4  ;;  %s283_s6 = sand.u32 1, %s1030_s25   ;;  %s299_s12 = int_to_ptr.vmem [resolvable:$true] %s298_s12 }
  0x32   : > { %s284_s7 = scalar_lea.sflag [#allocation6], %s283_s6  ;;  %310 = sbr.rel (%p1144_p12) target bundleno = 208 (0xd0), region = 36 }
  0x33   : > { %719 = dma.hbm_to_vmem [thread:$0]  (!%p1155_p2), %s297_s5, 64, %s299_s12, %s284_s7, %s1033_s27, %s1033_s27, %s1034_s9  }
  0x34   : > { %s1192_s23 = sand.u32 (!%p1144_p12), 1, %s1006_s19  }
  0x35   : > { %s1195_s3 = sshll.u32 (!%p1144_p12), %s1192_s23, 2  ;;  %s313_s2 = scalar_lea.sflag (!%p1144_p12), [#allocation3], %s1192_s23 }
  0x36   : > { %s316_s15 = scalar_lea.vmem (!%p1144_p12), [#allocation2], %s1195_s3 }
  0x37   : > { %981 = dma.done.wait (%p1127_p7), %s313_s2, 64  }
  0x38   : > { %983 = vsyncadd (%p1127_p7), %s313_s2, 4294967232  ;;  %s322_s11 = sand.u32 1, %s1110_s26   ;;  %s326_s17 = scalar_lea.vmem [#allocation5], %s1195_s3 }
  0x39   : > { %s323_s14 = scalar_lea.sflag [#allocation6], %s322_s11 }
  0x3a   : > { %985 = dma.done.wait (%p1127_p7), %s323_s14, 64  }
  0x3b   : > { %987 = vsyncadd (%p1127_p7), %s323_s14, 4294967232 }
  0x3c   : > { %989 = dma.done.wait (%p72_p3), [#allocation6], 32  }
  0x3d   : > { %991 = vsyncadd (%p72_p3), [#allocation6], 4294967264  ;;  %v383_v0 = vld [vmem:[%s316_s15] sm:$0x3]  ;;  %s1035_s29 = smov 112   ;;  %s1036_s13 = smov 16   ;;  %v395_v4 = vlaneseq }
  0x3e   : > { %391 = vrot.lane.b32.xlu1 %v383_v0, %s1035_s29  ;;  %387 = vrot.lane.b32.xlu0 %v383_v0, %s1036_s13  ;;  %v418_v1 = vld [vmem:[%s326_s17] sm:$0x3]  ;;  %v384_v2 = vld [vmem:[%s316_s15 + $0x2] sm:$0x3]  ;;  %s689_s26 = sshll.u32 %s1014_s21, 1  ;;  %s690_s30 = sshll.u32 %s1018_s22, 2 }
  0x3f   : > { %422 = vrot.lane.b32.xlu2 %v418_v1, %s1036_s13  ;;  %v419_v3 = vld [vmem:[%s326_s17 + $0x2] sm:$0x3]  ;;  %v396_v5 = vand.u32 127, %v395_v4  ;;  %v381_v7 = vld [vmem:[#allocation7] sm:$0x3]  ;;  %s1330_s10 = sld [smem:[#allocation22_spill]]  ;;  %s456_s28 = sadd.s32 %s690_s30, %s689_s26 }
  0x40   : > { %v385_v10 = vmul.f32 %v383_v0, %v381_v7  ;;  %s691_s8 = sshll.u32 %s456_s28, 1  ;;  %s1331_s5 = sld [smem:[#allocation23_spill]]  ;;  %v386_v17 = vmul.f32 %v384_v2, %v381_v7 }
  0x41   : > { %v401_v6 = vand.u32 31, %v396_v5  ;;  %s365_s12 = scalar_lea.vmem [#allocation8], %s1195_s3  ;;  %s1333_s14 = sld [smem:[#allocation24_spill]] }
  0x42   : > { %s459_s6 = sshll.u32 %s365_s12, 4  ;;  %s460_s6 = int_to_ptr.vmem [resolvable:$true] %s459_s6 }
  0x43   : > { %vm1215_vm0 = vcmp.lt.s32.totalorder %v401_v6, 16 }
  0x45   : > { %v382_v9 = vld [vmem:[%s1330_s10] sm:$0x3] }
  0x46   : > { %393 = vrot.lane.b32.xlu1 %v384_v2, %s1035_s29  ;;  %389 = vrot.lane.b32.xlu0 %v384_v2, %s1036_s13  ;;  %s458_s18 = scalar_lea.hbm %s1331_s5, %s691_s8  ;;  %s912_s9 = scalar_lea.hbm %s1331_s5, 16 }
  0x47   : > { %424 = vrot.lane.b32.xlu2 %v419_v3, %s1036_s13  ;;  %s461_s2 = sshll.u32 %s458_s18, 4  ;;  %s1233_s17 = scalar_lea.hbm %s1333_s14, %s691_s8  ;;  %s462_s2 = int_to_ptr.hbm [resolvable:$true] %s461_s2 }
  0x48   : > { %s906_s13 = sshra.s32 %s462_s2, 4  ;;  %s907_s13 = int_to_ptr.hbm [resolvable:$true] %s906_s13 }
  0x49   : > { %s908_s26 = scalar_lea.hbm %s907_s13, 4  ;;  %p913_p11 = scmp.lt.s32.totalorder %s907_s13, %s1331_s5 }
  0x4a   : > { %p909_p3 = scmp.ne.s32.totalorder %s907_s13, %s908_s26  ;;  %p914_p12 = scmp.lt.s32.totalorder %s912_s9, %s908_s26 }
  0x4c   : > { %p910_p7 = pnand %p909_p3, %p1131_p8  ;;  %p915_p13 = por %p914_p12, %p913_p11 }
  0x4e   : > { %428 = vrot.lane.b32.xlu1 %v419_v3, %s1035_s29  ;;  %426 = vrot.lane.b32.xlu0 %v418_v1, %s1035_s29  ;;  %s439_s29 = scalar_lea.sflag [#allocation4], %s1192_s23  ;;  %p911_p10 = pneg %p910_p7 }
  0x50   : > { %p916_p0 = pnand %p915_p13, %p911_p10 }
  0x99   : > { %v423_v16 = vpop.permute.xlu2 %422 }
  0xa1   : > { %v425_v23 = vpop.permute.xlu2 %424 }
  0xb0   : > { %v392_v11 = vpop.permute.xlu1 %391  ;;  %v388_v12 = vpop.permute.xlu0 %387 }
  0xb1   : > { %v410_v13 = vsel %vm1215_vm0, %v392_v11, %v388_v12 }
  0xb2   : > { %v412_v14 = vmul.f32 %v410_v13, %v382_v9 }
  0xb4   : > { %v414_v15 = vadd.f32 %v412_v14, %v385_v10 }
  0xb6   : > { %416 = vst [vmem:[%s365_s12] sm:$0x3] %v414_v15 }
  0xb8   : > { %v394_v18 = vpop.permute.xlu1 %393  ;;  %v390_v19 = vpop.permute.xlu0 %389 }
  0xb9   : > { %v411_v20 = vsel %vm1215_vm0, %v394_v18, %v390_v19 }
  0xba   : > { %v413_v21 = vmul.f32 %v411_v20, %v382_v9 }
  0xbc   : > { %v415_v22 = vadd.f32 %v413_v21, %v386_v17 }
  0xbe   : > { %417 = vst [vmem:[%s365_s12 + $0x2] sm:$0x3] %v415_v22 }
  0xbf   : > { %919 = shalt.err (!%p916_p0)
}
  0xc0   : > { %s1037_s8 = smov 32   ;;  %s1038_s21 = smov 2   ;;  %v421_v24 = vmul.f32 %v419_v3, %v381_v7  ;;  %v420_v25 = vmul.f32 %v418_v1, %v381_v7  ;;  %v429_v26 = vpop.permute.xlu1 %428  ;;  %v427_v27 = vpop.permute.xlu0 %426 }
  0xc1   : > { %705 = dma.vmem_to_hbm [thread:$0]  (%p1131_p8), %s460_s6, 64, %s462_s2, %s439_s29, %s1037_s8, %s1037_s8, %s1038_s21   ;;  %v431_v28 = vsel %vm1215_vm0, %v429_v26, %v425_v23  ;;  %v430_v29 = vsel %vm1215_vm0, %v427_v27, %v423_v16 }
  0xc2   : > { %s372_s22 = scalar_lea.vmem [#allocation9], %s1195_s3  ;;  %v433_v30 = vmul.f32 %v431_v28, %v382_v9  ;;  %v432_v31 = vmul.f32 %v430_v29, %v382_v9  ;;  %s481_s12 = sshll.u32 %s1233_s17, 4  ;;  %s482_s12 = int_to_ptr.hbm [resolvable:$true] %s481_s12 }
  0xc3   : > { %s479_s18 = sshll.u32 %s372_s22, 4  ;;  %s444_s6 = scalar_lea.sflag [#allocation10], %s1192_s23  ;;  %s480_s18 = int_to_ptr.vmem [resolvable:$true] %s479_s18 }
  0xc4   : > { %v435_v32 = vadd.f32 %v433_v30, %v421_v24  ;;  %v434_v33 = vadd.f32 %v432_v31, %v420_v25  ;;  %s934_s2 = sshra.s32 %s482_s12, 4  ;;  %s940_s29 = scalar_lea.hbm %s1333_s14, 16  ;;  %s935_s2 = int_to_ptr.hbm [resolvable:$true] %s934_s2 }
  0xc5   : > { %s936_s3 = scalar_lea.hbm %s935_s2, 4  ;;  %p941_p6 = scmp.lt.s32.totalorder %s935_s2, %s1333_s14 }
  0xc6   : > { %437 = vst [vmem:[%s372_s22 + $0x2] sm:$0x3] %v435_v32  ;;  %p937_p1 = scmp.ne.s32.totalorder %s935_s2, %s936_s3  ;;  %p942_p5 = scmp.lt.s32.totalorder %s940_s29, %s936_s3 }
  0xc7   : > { %436 = vst [vmem:[%s372_s22] sm:$0x3] %v434_v33 }
  0xc8   : > { %p938_p2 = pnand %p937_p1, %p1131_p8  ;;  %p943_p3 = por %p942_p5, %p941_p6 }
  0xca   : > { %p939_p4 = pneg %p938_p2 }
  0xcc   : > { %p944_p7 = pnand %p943_p3, %p939_p4 }
  0xce   : > { %947 = shalt.err (!%p944_p7)
}
  0xcf   : > { %706 = dma.vmem_to_hbm [thread:$0]  (%p1131_p8), %s480_s18, 64, %s482_s12, %s444_s6, %s1037_s8, %s1037_s8, %s1038_s21  }
  0xd0 PF: > { %s1334_s23 = sld [smem:[#allocation16_spill]]  ;;  %p730_p10 = scmp.ge.s32.totalorder %s1030_s25, 2 }
  0xd2   : > { %p721_p11 = pnand %p730_p10, %p1135_p9 }
  0xd4   : > { %p722_p12 = pneg %p721_p11 }
  0xd6   : > { %s496_s30 = sand.u32 1, %s1334_s23  }
  0xd7   : > { %s497_s27 = scalar_lea.sflag [#allocation4], %s496_s30 }
  0xd8   : > { %993 = dma.done.wait (%p722_p12), %s497_s27, 64  }
  0xd9   : > { %995 = vsyncadd (%p722_p12), %s497_s27, 4294967232  ;;  %s507_s9 = scalar_lea.sflag [#allocation10], %s496_s30 }
  0xda   : > { %997 = dma.done.wait (%p722_p12), %s507_s9, 64  }
  0xdb   : > { %999 = vsyncadd (%p722_p12), %s507_s9, 4294967232  ;;  %s28_s25 = sadd.s32 1, %s1030_s25   ;;  %s1336_s21 = sld [smem:[#allocation17_spill]] }
  0xdc   : > { %p25_p13 = scmp.ge.s32.totalorder %s28_s25, 6   ;;  %s1337_s23 = sld [smem:[#allocation20_spill]] }
  0xdd   : > { %s1338_s18 = smov %s1006_s19  ;;  %s1339_s19 = smov %s1010_s20 }
  0xde   : > { %s1340_s20 = smov %s1179_s4  ;;  %s1341_s22 = smov %s1026_s24 }
  0xdf   : > { %s1342_s24 = smov %s1348_s16  ;;  %27 = sbr.rel (!%p25_p13) target bundleno = 16 (0x10), region = 119 }
  0xe4   :  { %513 = vsyncpa [#allocation3], 1 }
  0xe5   :  { %515 = vsyncpa [#allocation3 + $0x1], 1 }
  0xe6   :  { %516 = vsyncpa [#allocation6], 1 }
  0xe7   :  { %518 = vsyncpa [#allocation6 + $0x1], 1 }
  0xe8   :  { %519 = vsyncpa [#allocation4], 1 }
  0xe9   :  { %521 = vsyncpa [#allocation4 + $0x1], 1 }
  0xea   :  { %522 = vsyncpa [#allocation10], 1 }
  0xeb   :  { %524 = vsyncpa [#allocation10 + $0x1], 1 }

</bundles_post_ra>
